<compile_context>
chip_gen: v6e
topology: v6e:2x2x1
jax: 0.10.0
libtpu: 0.0.40
codegen_flags: <defaults>
</compile_context>

<pallas_src>
import functools

import jax
import jax.numpy as jnp
import numpy as np
from jax.experimental import pallas as pl
from jax.experimental.pallas import tpu as pltpu

_VMEM_TILE_BUDGET = 32 << 20  # bytes for the double-buffered in+out blocks


def _round_up(x, m):
    return ((x + m - 1) // m) * m


def _sublane_rows(dtype):
    # Rows per fully-packed sublane tile: 8 for 32-bit, 16 for bf16, 32 for 8-bit.
    return max(8, 32 // jnp.dtype(dtype).itemsize)


def _rmsnorm_kernel(x_ref, w_ref, o_ref, *, eps):
    # x_ref: (tt, H). Variance math in float32 (as the module requires);
    # rsqrt goes to the EUP; the per-row reduce is the only cross-lane op.
    x = x_ref[...].astype(jnp.float32)
    var = jnp.mean(x * x, axis=-1, keepdims=True)        # (tt, 1)
    inv = jax.lax.rsqrt(var + eps)                        # EUP
    # HF ordering: cast normalized activations back to the input dtype, then
    # scale by the weight (promotion follows the weight's dtype).
    y = (x * inv).astype(x_ref.dtype)
    o_ref[...] = (w_ref[...] * y).astype(o_ref.dtype)


def _pick_token_tile(T, H, in_itemsize, out_itemsize, sub, requested):
    # Per grid step, input + output blocks are each double-buffered.
    per_row = 2 * H * (in_itemsize + out_itemsize)
    tt_cap = max(sub, (_VMEM_TILE_BUDGET // per_row) // sub * sub)
    tt = min(requested if requested is not None else 1024, tt_cap)
    tt = max(sub, (tt // sub) * sub)
    # Keep at least two grid steps so the "parallel" axis can split across
    # TensorCores; shrink the tile rather than leave a core idle.
    if T > sub and pl.cdiv(T, tt) < 2:
        tt = max(sub, _round_up(pl.cdiv(T, 2), sub))
    return tt


def llama_rmsnorm(hidden_states, weight, eps=1e-6, token_tile=None):
    """Pallas LlamaRMSNorm. hidden_states: (..., H); weight: (H,)."""
    orig_shape = hidden_states.shape
    H = orig_shape[-1]
    x2d = hidden_states.reshape(-1, H)
    T = x2d.shape[0]

    w2d = weight.reshape(1, H)                       # native dtype (PyTorch keeps it)
    out_dtype = jnp.result_type(hidden_states.dtype, weight.dtype)

    in_item = jnp.dtype(hidden_states.dtype).itemsize
    out_item = jnp.dtype(out_dtype).itemsize
    sub = _sublane_rows(hidden_states.dtype)
    tt = _pick_token_tile(T, H, in_item, out_item, sub, token_tile)
    grid = (pl.cdiv(T, tt),)

    # Scoped-VMEM request sized to the double-buffered tiles (+ headroom).
    needed = 2 * tt * H * (in_item + out_item) + 2 * H * jnp.dtype(weight.dtype).itemsize
    vmem_limit = int(min(max(needed * 5 // 4, 16 << 20), 48 << 20))

    out = pl.pallas_call(
        functools.partial(_rmsnorm_kernel, eps=eps),
        out_shape=jax.ShapeDtypeStruct((T, H), out_dtype),
        grid_spec=pltpu.PrefetchScalarGridSpec(
            num_scalar_prefetch=0,
            grid=grid,
            in_specs=[
                pl.BlockSpec((tt, H), lambda i: (i, 0)),   # x token tile
                pl.BlockSpec((1, H), lambda i: (0, 0)),    # weight (resident)
            ],
            out_specs=pl.BlockSpec((tt, H), lambda i: (i, 0)),
        ),
        compiler_params=pltpu.CompilerParams(
            dimension_semantics=("parallel",),
            vmem_limit_bytes=vmem_limit),
    )(x2d, w2d)

    return out.reshape(orig_shape[:-1] + (H,))


def _reference(x, w, eps):
    xf = x.astype(jnp.float32)
    var = jnp.mean(xf * xf, axis=-1, keepdims=True)
    y = xf * jax.lax.rsqrt(var + eps)
    return w * y.astype(x.dtype)


if __name__ == "__main__":
    key = jax.random.PRNGKey(0)
    k_x1, k_x2, k_w = jax.random.split(key, 3)

    H = 256          # hidden_size (lane-dense, multiple of 128)
    EPS = 1e-6

    weight = 1.0 + 0.1 * jax.random.normal(k_w, (H,), jnp.float32)

    # Case 1: (batch=2, seq=8, hidden=256) -> 16 tokens, divides evenly.
    x1 = jax.random.normal(k_x1, (2, 8, H), jnp.float32)
    y1 = jax.block_until_ready(llama_rmsnorm(x1, weight, eps=EPS))
    np.testing.assert_allclose(np.asarray(y1),
                               np.asarray(_reference(x1, weight, EPS)),
                               rtol=1e-6, atol=1e-6)

    # Case 2: ragged token count (3*5 = 15 tokens) -> exercises the masked
    # partial last block (no wrapper pad/slice any more).
    x2 = jax.random.normal(k_x2, (3, 5, H), jnp.float32)
    y2 = jax.block_until_ready(llama_rmsnorm(x2, weight, eps=EPS))
    np.testing.assert_allclose(np.asarray(y2),
                               np.asarray(_reference(x2, weight, EPS)),
                               rtol=1e-6, atol=1e-6)

    print("KERNEL_OK")
</pallas_src>

<mosaic_0001>
module attributes {stable_mosaic.version = 11 : i64} {
  func.func @_rmsnorm_kernel(%arg0: i32, %arg1: memref<8x256xf32, #tpu.memory_space<vmem>>, %arg2: memref<1x256xf32, #tpu.memory_space<vmem>>, %arg3: memref<8x256xf32, #tpu.memory_space<vmem>>) attributes {dimension_semantics = [#tpu.dimension_semantics<parallel>], iteration_bounds = array<i64: 2>, scalar_prefetch = 0 : i64, scratch_operands = 0 : i64, tpu.core_type = #tpu.core_type<tc>, window_params = [{transform_indices = @transform_0, window_bounds = array<i64: 8, 256>}, {pipeline_mode = #tpu.pipeline_mode<synchronous>, transform_indices = @transform_1, window_bounds = array<i64: 1, 256>}, {transform_indices = @transform_2, window_bounds = array<i64: 8, 256>}]} {
    %c0 = arith.constant 0 : index
    %c0_0 = arith.constant 0 : index
    %0 = vector.load %arg1[%c0, %c0_0] : memref<8x256xf32, #tpu.memory_space<vmem>>, vector<8x256xf32>
    %1 = arith.mulf %0, %0 : vector<8x256xf32>
    %cst = arith.constant dense<0.000000e+00> : vector<8xf32>
    %2 = vector.multi_reduction <add>, %1, %cst [1] : vector<8x256xf32> to vector<8xf32>
    %3 = vector.shape_cast %2 : vector<8xf32> to vector<8x1xf32>
    %cst_1 = arith.constant 2.560000e+02 : f32
    %4 = vector.broadcast %cst_1 : f32 to vector<8x1xf32>
    %5 = arith.divf %3, %4 : vector<8x1xf32>
    %cst_2 = arith.constant 9.99999997E-7 : f32
    %6 = vector.broadcast %cst_2 : f32 to vector<8x1xf32>
    %7 = arith.addf %5, %6 : vector<8x1xf32>
    %8 = math.rsqrt %7 : vector<8x1xf32>
    %9 = vector.broadcast %8 : vector<8x1xf32> to vector<8x256xf32>
    %10 = arith.mulf %0, %9 : vector<8x256xf32>
    %c0_3 = arith.constant 0 : index
    %c0_4 = arith.constant 0 : index
    %11 = vector.load %arg2[%c0_3, %c0_4] : memref<1x256xf32, #tpu.memory_space<vmem>>, vector<1x256xf32>
    %12 = vector.broadcast %11 : vector<1x256xf32> to vector<8x256xf32>
    %13 = arith.mulf %12, %10 : vector<8x256xf32>
    %c0_5 = arith.constant 0 : index
    %c0_6 = arith.constant 0 : index
    %14 = vector.load %arg3[%c0_5, %c0_6] : memref<8x256xf32, #tpu.memory_space<vmem>>, vector<8x256xf32>
    tpu.vector_store %arg3[%c0_5, %c0_6], %13 {strides = array<i32>} : memref<8x256xf32, #tpu.memory_space<vmem>>, vector<8x256xf32>,
    return
  }
  func.func @transform_0(%arg0: i32) -> (i32, i32) {
    %c0_i32 = arith.constant 0 : i32
    %c0_i32_0 = arith.constant 0 : i32
    return %arg0, %c0_i32 : i32, i32
  }
  func.func @transform_1(%arg0: i32) -> (i32, i32) {
    %c0_i32 = arith.constant 0 : i32
    %c0_i32_0 = arith.constant 0 : i32
    %c0_i32_1 = arith.constant 0 : i32
    return %c0_i32, %c0_i32_0 : i32, i32
  }
  func.func @transform_2(%arg0: i32) -> (i32, i32) {
    %c0_i32 = arith.constant 0 : i32
    %c0_i32_0 = arith.constant 0 : i32
    return %arg0, %c0_i32 : i32, i32
  }
}

</mosaic_0001>

<bundles_post_ra>
// kernel: tpu_custom_call.1
= control target key start
LH: loop header
LB: loop body
LE: loop exit
PB: predicated region body
PF: predicated region fallthrough
CT: control target
= control target key end

     0   :  { %7 = vsyncpa [#allocation3], 0  ;;  %s688_s0 = inlined_call_operand.hbm [shape: f32[16,256], index: 0, kind: input, shape index: {}]   ;;  %s689_s1 = inlined_call_operand.hbm [shape: f32[1,256], index: 1, kind: input, shape index: {}]   ;;  %s690_s2 = inlined_call_operand.hbm [shape: f32[16,256], index: 2, kind: output, shape index: {}]  }
   0x1   :  { %9 = vsyncpa [#allocation3 + $0x1], 0 }
   0x2   :  { %10 = vsyncpa [#allocation6], 0 }
   0x3   :  { %11 = vsyncpa [#allocation4], 0 }
   0x4   :  { %13 = vsyncpa [#allocation4 + $0x1], 0  ;;  %s516_s9 = smov 0   ;;  %s518_s10 = smov 0  }
   0x5   :  { %s520_s11 = smov 0   ;;  %s522_s12 = smov 0  }
   0x6 LB: > { %s537_s13 = sadd.s32 4294967295, %s496_s12   ;;  %s297_s14 = sadd.s32 4294967294, %s496_s12   ;;  %s496_s12 = sphi %s522_s12, %s713_s12   ;;  %s492_s11 = sphi %s520_s11, %s712_s11   ;;  %s488_s10 = sphi %s518_s10, %s711_s10   ;;  %s484_s9 = sphi %s516_s9, %s710_s9  }
   0x7   : > { %p39_p0 = scmp.ne.s32.totalorder %s488_s10, %s484_s9  ;;  %p691_p1 = scmp.eq.s32.totalorder %s537_s13, 0 }
   0x8   : > { %p90_p3 = scmp.eq.s32.totalorder %s297_s14, 1  ;;  %p298_p5 = scmp.ge.s32.totalorder %s496_s12, 1 }
   0x9   : > { %p546_p4 = por %p691_p1, %p39_p0  ;;  %p97_p7 = scmp.lt.s32.totalorder %s496_s12, 3 }
   0xa   : > { %p551_p6 = por %p90_p3, %p39_p0  ;;  %s498_s18 = smov [#allocation5]  }
   0xb   : > { %s695_s15 = scalar_select %p546_p4, 1, 0 }
   0xc   : > { %s696_s16 = scalar_select %p551_p6, 1, 0 }
   0xd   : > { %p556_p8 = pnand %p298_p5, %p97_p7  ;;  %s110_s19 = sshll.u32 %s498_s18, 4  ;;  %s111_s19 = int_to_ptr.vmem [resolvable:$true] %s110_s19 }
   0xe   : > { %s564_s20 = sadd.s32 1, %s496_s12   ;;  %s26_s24 = sadd.s32 1, %s492_s11 }
   0xf   : > { %s697_s17 = scalar_select %p556_p8, 1, 0 }
  0x10   : > { %p323_p10 = pneg %p556_p8  ;;  %s23_s22 = ssub.s32 %s496_s12, %s564_s20 }
  0x11   : > { %p574_p12 = scmp.eq.s32.totalorder %s23_s22, 0  ;;  %p33_p13 = scmp.ne.s32.totalorder %s492_s11, %s488_s10 }
  0x12   : > { %p568_p11 = pnand %p323_p10, %p691_p1  ;;  %s385_s25 = scalar_lea.vmem %s111_s19, 32 }
  0x13   : > { %p386_p3 = scmp.ne.s32.totalorder %s111_s19, %s385_s25  ;;  %p393_p9 = scmp.lt.s32.totalorder %s111_s19, %s111_s19 }
  0x14   : > { %p376_p0 = pneg %p568_p11  ;;  %p394_p2 = scmp.lt.s32.totalorder %s385_s25, %s385_s25 }
  0x16   : > { %p388_p5 = pnand %p386_p3, %p376_p0  ;;  %p395_p10 = por %p394_p2, %p393_p9 }
  0x18   : > { %p389_p7 = pneg %p388_p5 }
  0x1a   : > { %p396_p1 = pnand %p395_p10, %p389_p7 }
  0x1c   : > { %399 = shalt.err (!%p396_p1)
}
  0x1d   : > { %326 = dma.hbm_to_vmem [thread:$0]  (!%p568_p11), %s689_s1, 32, %s111_s19, [#allocation6]  }
  0x1e   : > { %s591_s28 = scalar_select %p574_p12, %s492_s11, %s26_s24  }
  0x1f   : > { %p34_p1 = scmp.eq.s32.totalorder %s496_s12, 0  ;;  %p700_p2 = scmp.eq.s32.totalorder %s537_s13, 1 }
  0x20   : > { %p336_p0 = scmp.lt.s32.totalorder %s496_s12, 2  ;;  %s121_s30 = sand.u32 1, %s492_s11  }
  0x21   : > { %p599_p9 = por %p700_p2, %p33_p13  ;;  %p35_p3 = por %p34_p1, %p33_p13 }
  0x22   : > { %s301_s3 = sshll.u32 %s121_s30, 4  ;;  %s313_s4 = sshll.u32 %s496_s12, 8 }
  0x23   : > { %s701_s29 = scalar_select %p599_p9, 1, 0 }
  0x24   : > { %s612_s7 = scalar_lea.hbm %s688_s0, %s313_s4  ;;  %s125_s8 = scalar_lea.vmem [#allocation2], %s301_s3 }
  0x25   : > { %s133_s14 = sshll.u32 %s125_s8, 4  ;;  %p614_p11 = pnand %p336_p0, %p35_p3  ;;  %s134_s14 = int_to_ptr.vmem [resolvable:$true] %s133_s14 }
  0x26   : > { %s122_s19 = scalar_lea.sflag [#allocation3], %s121_s30  ;;  %s400_s21 = scalar_lea.hbm %s612_s7, 256 }
  0x27   : > { %p401_p12 = scmp.ne.s32.totalorder %s612_s7, %s400_s21  ;;  %p402_p13 = pneg %p614_p11 }
  0x28   : > { %s405_s24 = scalar_lea.hbm %s688_s0, 512  ;;  %p406_p10 = scmp.lt.s32.totalorder %s612_s7, %s688_s0 }
  0x29   : > { %p403_p5 = pnand %p402_p13, %p401_p12  ;;  %p407_p1 = scmp.lt.s32.totalorder %s405_s24, %s400_s21 }
  0x2b   : > { %p404_p7 = pneg %p403_p5  ;;  %p408_p2 = por %p407_p1, %p406_p10 }
  0x2d   : > { %p409_p0 = pnand %p408_p2, %p404_p7 }
  0x2f   : > { %412 = shalt.err (!%p409_p0)
}
  0x30   : > { %s413_s27 = scalar_lea.vmem %s134_s14, 256  ;;  %s499_s30 = smov [#allocation2]  }
  0x31   : > { %p414_p3 = scmp.ne.s32.totalorder %s134_s14, %s413_s27  ;;  %s418_s3 = sshll.u32 %s499_s30, 4  ;;  %s419_s3 = int_to_ptr.vmem [resolvable:$false] %s418_s3 }
  0x32   : > { %s420_s4 = scalar_lea.vmem %s419_s3, 512  ;;  %p421_p12 = scmp.lt.s32.totalorder %s134_s14, %s419_s3 }
  0x33   : > { %p416_p6 = pnand %p414_p3, %p402_p13  ;;  %p422_p5 = scmp.lt.s32.totalorder %s420_s4, %s413_s27 }
  0x35   : > { %p417_p9 = pneg %p416_p6  ;;  %p423_p4 = por %p422_p5, %p421_p12 }
  0x37   : > { %p424_p8 = pnand %p423_p4, %p417_p9 }
  0x39   : > { %427 = shalt.err (!%p424_p8)
}
  0x3a   : > { %330 = dma.hbm_to_vmem [thread:$0]  (!%p614_p11), %s612_s7, 256, %s134_s14, %s122_s19  }
  0x3b   : > { %p703_p7 = scmp.ne.s32.totalorder %s697_s17, 0 }
  0x3c   : > { %s635_s5 = sand.u32 (!%p703_p7), 1, %s488_s10   ;;  %p704_p6 = scmp.ne.s32.totalorder (!%p703_p7), %s695_s15, 0 }
  0x3d   : > { %142 = sbr.rel (%p703_p7) target bundleno = 248 (0xf8), region = 28  ;;  %s305_s6 = sshll.u32 (!%p703_p7), %s635_s5, 4 }
  0x3e   : > { %s145_s8 = scalar_lea.sflag (!%p703_p7), [#allocation3], %s635_s5  ;;  %s148_s21 = scalar_lea.vmem (!%p703_p7), [#allocation2], %s305_s6 }
  0x42   : > { %471 = dma.done.wait (%p704_p6), %s145_s8, 256  }
  0x43   : > { %473 = vsyncadd (%p704_p6), %s145_s8, 4294967040  ;;  %p705_p4 = scmp.eq.s32.totalorder %s537_s13, 0 }
  0x45   : > { %475 = dma.done.wait (%p705_p4), [#allocation6], 32   ;;  %p706_p8 = pmov %p705_p4 }
  0x46   : > { %v173_v0 = vld [vmem:[%s148_s21] sm:$0xff]  ;;  %v174_v1 = vld [vmem:[%s148_s21 + $0x8] sm:$0xff]  ;;  %v188_v8 = vlaneseq  ;;  %s314_s15 = sshll.u32 %s537_s13, 8  ;;  %s172_s17 = scalar_lea.vmem [#allocation7], %s305_s6 }
  0x47   : > { %477 = vsyncadd (%p706_p8), [#allocation6], 4294967264  ;;  %v175_v2 = vmul.f32 %v173_v0, %v173_v0  ;;  %v176_v3 = vmul.f32 %v174_v1, %v174_v1  ;;  %v186_v12 = vld [vmem:[#allocation5] sm:$0x3]  ;;  %s217_s7 = sshll.u32 %s172_s17, 4  ;;  %s651_s19 = scalar_lea.hbm %s690_s2, %s314_s15  ;;  %s218_s7 = int_to_ptr.vmem [resolvable:$true] %s217_s7 }
  0x48   : > { %v189_v9 = vshrl.u32 %v188_v8, 7  ;;  %s203_s22 = scalar_lea.sflag [#allocation4], %s635_s5  ;;  %s428_s23 = scalar_lea.vmem %s218_s7, 256 }
  0x49   : > { %v177_v4 = vadd.f32 %v176_v3, %v175_v2  ;;  %p429_p9 = scmp.ne.s32.totalorder %s218_s7, %s428_s23  ;;  %p707_p11 = scmp.ne.s32.totalorder %s701_s29, 0 }
  0x4a   : > { %v190_v10 = vsub.s32 0, %v189_v9  ;;  %v194_v11 = vsub.s32 1, %v189_v9  ;;  %s500_s13 = smov [#allocation7]  }
  0x4b   : > { %178 = vadd.xlane.f32.xlu0 %v177_v4  ;;  %p430_p13 = pnand %p429_p9, %p707_p11  ;;  %s432_s24 = sshll.u32 %s500_s13, 4  ;;  %s433_s24 = int_to_ptr.vmem [resolvable:$false] %s432_s24 }
  0x4c   : > { %v191_v13 = vrot.slane %v186_v12, %v190_v10  ;;  %v195_v14 = vrot.slane %v186_v12, %v194_v11  ;;  %s434_s25 = scalar_lea.vmem %s433_s24, 512  ;;  %p435_p1 = scmp.lt.s32.totalorder %s218_s7, %s433_s24 }
  0x4d   : > { %p431_p10 = pneg %p430_p13  ;;  %p436_p2 = scmp.lt.s32.totalorder %s434_s25, %s428_s23 }
  0x4f   : > { %p437_p0 = por %p436_p2, %p435_p1 }
  0x51   : > { %p438_p3 = pnand %p437_p0, %p431_p10 }
  0xd4   : > { %v179_v5 = vpop.xlane.xlu0 %178 }
  0xd5   : > { %v181_v6 = vmul.f32 0.00390625, %v179_v5 }
  0xd7   : > { %v182_v7 = vadd.f32 1e-06, %v181_v6 }
  0xd9   : > { %372 = vrsqrt.f32 %v182_v7 }
  0xe6   : > { %v373_v15 = vpop.eup %372 }
  0xe7   : > { %v184_v16 = vmul.f32 %v373_v15, %v173_v0  ;;  %v185_v17 = vmul.f32 %v373_v15, %v174_v1 }
  0xe9   : > { %v198_v18 = vmul.f32 %v191_v13, %v184_v16  ;;  %v199_v19 = vmul.f32 %v195_v14, %v185_v17 }
  0xeb   : > { %200 = vst [vmem:[%s172_s17] sm:$0xff] %v198_v18  ;;  %201 = vst [vmem:[%s172_s17 + $0x8] sm:$0xff] %v199_v19 }
  0xec   : > { %441 = shalt.err (!%p438_p3)
}
  0xed   : > { %s442_s26 = scalar_lea.hbm %s651_s19, 256  ;;  %s446_s3 = scalar_lea.hbm %s690_s2, 512 }
  0xee   : > { %p443_p12 = scmp.ne.s32.totalorder %s651_s19, %s442_s26  ;;  %p447_p6 = scmp.lt.s32.totalorder %s651_s19, %s690_s2 }
  0xef   : > { %p448_p4 = scmp.lt.s32.totalorder %s446_s3, %s442_s26 }
  0xf0   : > { %p444_p5 = pnand %p443_p12, %p707_p11 }
  0xf1   : > { %p449_p8 = por %p448_p4, %p447_p6 }
  0xf2   : > { %p445_p7 = pneg %p444_p5 }
  0xf4   : > { %p450_p9 = pnand %p449_p8, %p445_p7 }
  0xf6   : > { %453 = shalt.err (!%p450_p9)
}
  0xf7   : > { %321 = dma.vmem_to_hbm [thread:$0]  (%p707_p11), %s218_s7, 256, %s651_s19, %s203_s22  }
  0xf8 PF: > { %s229_s6 = sand.u32 1, %s484_s9   ;;  %p708_p13 = scmp.ne.s32.totalorder %s696_s16, 0 }
  0xf9   : > { %p709_p10 = scmp.ge.s32.totalorder %s496_s12, 2  ;;  %s230_s8 = scalar_lea.sflag [#allocation4], %s229_s6 }
  0xfb   : > { %p332_p1 = pnand %p709_p10, %p708_p13 }
  0xfd   : > { %p333_p2 = pneg %p332_p1 }
  0xff   : > { %479 = dma.done.wait (%p333_p2), %s230_s8, 256  }
 0x100   : > { %481 = vsyncadd (%p333_p2), %s230_s8, 4294967040  ;;  %p16_p0 = scmp.ge.s32.totalorder %s564_s20, 4   ;;  %s710_s9 = smov %s488_s10 }
 0x101   : > { %s711_s10 = smov %s492_s11  ;;  %s712_s11 = smov %s591_s28 }
 0x102   : > { %s713_s12 = smov %s564_s20  ;;  %18 = sbr.rel (!%p16_p0) target bundleno = 6 (0x6), region = 77 }
 0x107   :  { %235 = vsyncpa [#allocation3], 1 }
 0x108   :  { %237 = vsyncpa [#allocation3 + $0x1], 1 }
 0x109   :  { %238 = vsyncpa [#allocation6], 1 }
 0x10a   :  { %239 = vsyncpa [#allocation4], 1 }
 0x10b   :  { %241 = vsyncpa [#allocation4 + $0x1], 1 }

</bundles_post_ra>
